<compile_context>
chip_gen: v5e
topology: v5e:2x2
jax: 0.10.0
libtpu: 0.0.40
codegen_flags: <defaults>
</compile_context>

<pallas_src>
import functools

import jax
import jax.numpy as jnp
from jax.experimental import pallas as pl
from jax.experimental.pallas import tpu as pltpu


def _round_up(x, m):
    return (x + m - 1) // m * m


# ----------------------------------------------------------------------------
# Kernel
# ----------------------------------------------------------------------------
def _dueling_head_kernel(x_ref, w1_ref, b1_ref, w2_ref, b2_ref, o_ref, *,
                         o_real, v_col, m_col):
    cdt = w1_ref.dtype
    # In-kernel cast (VPU) rides under MXU/DMA slack; avoids a separate
    # wrapper-side XLA pass over x when compute_dtype is bf16.
    x = x_ref[...].astype(cdt)

    # Fused first layer for BOTH branches: one [bb, H] x [H, 2*Hb] MXU pass.
    h = jnp.dot(x, w1_ref[...], preferred_element_type=jnp.float32)
    h = jnp.maximum(h + b1_ref[...], 0.0)            # f32 bias + ReLU (VPU)

    # Fused second layer: block-diagonal [2*Hb, Op] slab:
    #   cols [0:O)  <- w2a           (rows Hb..Hb+H)   -> advantage
    #   col  m_col  <- w2a @ 1/O     (rows Hb..Hb+H)   -> mean-of-A
    #   col  v_col  <- w2s           (rows 0..H)       -> state value
    # Everything comes out of a single lane-padded MXU pass.
    out2 = jnp.dot(h.astype(cdt), w2_ref[...],
                   preferred_element_type=jnp.float32) + b2_ref[...]

    a = out2[:, :o_real]
    v = out2[:, v_col:v_col + 1]
    a_mean = out2[:, m_col:m_col + 1]

    # Narrow store of only the real O columns (masked vst, but far fewer
    # HBM writeback bytes than a 128-wide padded output when O << 128).
    o_ref[...] = (v + a - a_mean).astype(o_ref.dtype)


# ----------------------------------------------------------------------------
# Host-side parameter packing
# ----------------------------------------------------------------------------
def pack_params(params, hidden_size, output_size, compute_dtype=jnp.float32):
    """Pack per-branch Linear params into fused, lane-padded slabs."""
    w1s, b1s, w2s, b2s, w1a, b1a, w2a, b2a = params
    H, O = hidden_size, output_size
    Hb = _round_up(H, 128)          # per-branch hidden width (lane aligned)
    Op = _round_up(O + 2, 128)      # advantage cols + mean col + value col
    v_col, m_col = Op - 1, Op - 2

    # Fused first layer: [H, 2*Hb] = [ w1s | 0pad | w1a | 0pad ]
    w1 = jnp.zeros((H, 2 * Hb), jnp.float32)
    w1 = w1.at[:, :H].set(w1s).at[:, Hb:Hb + H].set(w1a)
    b1 = jnp.zeros((1, 2 * Hb), jnp.float32)
    b1 = b1.at[:, :H].set(b1s).at[:, Hb:Hb + H].set(b1a)

    # Fused second layer (block-diagonal): advantage + mean-of-A + value head.
    w2 = jnp.zeros((2 * Hb, Op), jnp.float32)
    w2 = w2.at[Hb:Hb + H, :O].set(w2a)
    w2 = w2.at[Hb:Hb + H, m_col].set(jnp.sum(w2a, axis=1) / O)   # mean column
    w2 = w2.at[:H, v_col].set(w2s.reshape(H))                    # value column
    b2 = jnp.zeros((1, Op), jnp.float32)
    b2 = b2.at[:, :O].set(b2a)
    b2 = b2.at[:, m_col].set(jnp.mean(b2a))
    b2 = b2.at[:, v_col].set(jnp.asarray(b2s, jnp.float32).reshape(()))

    return dict(
        w1=w1.astype(compute_dtype), b1=b1,
        w2=w2.astype(compute_dtype), b2=b2,
        H=H, O=O, Hb=Hb, Op=Op, v_col=v_col, m_col=m_col,
        compute_dtype=compute_dtype)


# ----------------------------------------------------------------------------
# Wrapper
# ----------------------------------------------------------------------------
def offence_network_forward(x, packed, *, block_b=1024, out_dtype=jnp.float32):
    """x: [B, H] float32.  Returns Q-values [B, O] in out_dtype."""
    B, H = x.shape
    assert H == packed["H"], "feature dim mismatch"
    Hb, Op, O = packed["Hb"], packed["Op"], packed["O"]
    cdt = packed["compute_dtype"]
    wbytes = jnp.dtype(cdt).itemsize

    # Batch tile: as large as block_b allows, but keep >= 2 grid steps when the
    # batch is big enough so the "parallel" axis can shard across the two v7x
    # TensorCores.  Partial last tile (pl.cdiv grid) avoids a host-side
    # jnp.pad pass over x for non-multiple batches.
    bb = min(block_b, _round_up(max(pl.cdiv(B, 2), 1), 8))
    if bb >= B:
        bb = B
    grid = (pl.cdiv(B, bb),)

    kernel = functools.partial(_dueling_head_kernel, o_real=O,
                               v_col=packed["v_col"], m_col=packed["m_col"])

    # Explicit VMEM budget (v7x: 64 MiB physical / 32 MiB default scoped).
    buf_bytes = (
        2 * bb * H * x.dtype.itemsize                        # x tile (x2 buf)
        + 2 * bb * O * jnp.dtype(out_dtype).itemsize         # out tile (x2 buf)
        + 2 * (H * 2 * Hb * wbytes + 2 * Hb * 4              # resident weights
               + 2 * Hb * Op * wbytes + Op * 4)
        + bb * 2 * Hb * (4 + wbytes) + bb * Op * 4)          # h / casts / out2
    vmem_limit = int(min(64 << 20, max(2 * buf_bytes, 16 << 20)))

    cost = pl.CostEstimate(
        flops=2 * B * H * (2 * Hb) + 2 * B * (2 * Hb) * Op,
        transcendentals=0,
        bytes_accessed=(B * H * x.dtype.itemsize
                        + B * O * jnp.dtype(out_dtype).itemsize
                        + (H * 2 * Hb + 2 * Hb * Op) * wbytes
                        + (2 * Hb + Op) * 4))

    # NOTE: the weight/bias operands have constant index_maps so they are
    # fetched once and stay resident across batch tiles.  For very large H on
    # v7x (64 MiB VMEM), additionally pass pipeline_mode=pl.Buffered(1) on
    # those specs to single-buffer them.
    return pl.pallas_call(
        kernel,
        out_shape=jax.ShapeDtypeStruct((B, O), out_dtype),
        grid=grid,
        in_specs=[
            pl.BlockSpec((bb, H), lambda i: (i, 0)),        # x batch tile
            pl.BlockSpec((H, 2 * Hb), lambda i: (0, 0)),    # fused W1 (resident)
            pl.BlockSpec((1, 2 * Hb), lambda i: (0, 0)),    # fused b1
            pl.BlockSpec((2 * Hb, Op), lambda i: (0, 0)),   # fused W2 (A|mean|V)
            pl.BlockSpec((1, Op), lambda i: (0, 0)),        # fused b2
        ],
        out_specs=pl.BlockSpec((bb, O), lambda i: (i, 0)),  # narrow real-O output
        compiler_params=pltpu.CompilerParams(
            dimension_semantics=("parallel",),
            vmem_limit_bytes=vmem_limit),
        cost_estimate=cost,
    )(x, packed["w1"], packed["b1"], packed["w2"], packed["b2"])


# ----------------------------------------------------------------------------
# Init + pure-JAX reference (mirrors the PyTorch module)
# ----------------------------------------------------------------------------
def init_params(key, hidden_size, output_size):
    """PyTorch nn.Linear default init: U(-1/sqrt(fan_in), 1/sqrt(fan_in)).
    Weights stored as [in, out]; biases as [1, out]."""
    keys = jax.random.split(key, 8)

    def lin(kw, kb, fan_in, fan_out):
        bound = 1.0 / jnp.sqrt(fan_in)
        w = jax.random.uniform(kw, (fan_in, fan_out), jnp.float32, -bound, bound)
        b = jax.random.uniform(kb, (1, fan_out), jnp.float32, -bound, bound)
        return w, b

    w1s, b1s = lin(keys[0], keys[1], hidden_size, hidden_size)
    w2s, b2s = lin(keys[2], keys[3], hidden_size, 1)
    w1a, b1a = lin(keys[4], keys[5], hidden_size, hidden_size)
    w2a, b2a = lin(keys[6], keys[7], hidden_size, output_size)
    return (w1s, b1s, w2s, b2s, w1a, b1a, w2a, b2a)


def reference_forward(x, params):
    (w1s, b1s, w2s, b2s, w1a, b1a, w2a, b2a) = params
    v = jnp.maximum(x @ w1s + b1s, 0.0) @ w2s + b2s
    a = jnp.maximum(x @ w1a + b1a, 0.0) @ w2a + b2a
    return v + a - jnp.mean(a, axis=1, keepdims=True)


if __name__ == "__main__":
    # NOTE: x.cuda() in the PyTorch forward is a device move -> no-op here.
    B, H, O = 8, 32, 8   # batch, hiddenSize, outputSize (inputSize unused by forward)
    key = jax.random.PRNGKey(0)
    kx, kp = jax.random.split(key)
    x = jax.random.normal(kx, (B, H), jnp.float32)
    params = init_params(kp, H, O)
    q_ref = reference_forward(x, params)

    # f32 path (exact semantics of the PyTorch module)
    packed_f32 = pack_params(params, H, O, compute_dtype=jnp.float32)
    q = jax.block_until_ready(offence_network_forward(x, packed_f32))
    assert q.shape == (B, O)
    assert jnp.allclose(q, q_ref, atol=1e-4, rtol=1e-4), "f32 mismatch vs reference"

    # bf16 weights/activations on the MXU, f32 accumulation / f32 tail.
    packed_bf16 = pack_params(params, H, O, compute_dtype=jnp.bfloat16)
    q_bf16 = jax.block_until_ready(offence_network_forward(x, packed_bf16))
    assert q_bf16.shape == (B, O)
    assert jnp.allclose(q_bf16, q_ref, atol=1e-1, rtol=5e-2), "bf16 mismatch vs reference"

    # Larger, non-multiple batch: exercises the partial-last-tile grid
    # (no host-side padding) and a grid of length >= 2.
    xb = jax.random.normal(jax.random.PRNGKey(1), (300, H), jnp.float32)
    qb = jax.block_until_ready(offence_network_forward(xb, packed_f32))
    assert qb.shape == (300, O)
    assert jnp.allclose(qb, reference_forward(xb, params), atol=1e-4, rtol=1e-4), \
        "batched mismatch vs reference"

    print("KERNEL_OK")
</pallas_src>

<mosaic_0001>
module attributes {stable_mosaic.version = 11 : i64} {
  func.func @_dueling_head_kernel(%arg0: i32, %arg1: memref<8x32xf32, #tpu.memory_space<vmem>>, %arg2: memref<32x256xf32, #tpu.memory_space<vmem>>, %arg3: memref<1x256xf32, #tpu.memory_space<vmem>>, %arg4: memref<256x128xf32, #tpu.memory_space<vmem>>, %arg5: memref<1x128xf32, #tpu.memory_space<vmem>>, %arg6: memref<8x8xf32, #tpu.memory_space<vmem>>) attributes {dimension_semantics = [#tpu.dimension_semantics<parallel>], iteration_bounds = array<i64: 1>, scalar_prefetch = 0 : i64, scratch_operands = 0 : i64, tpu.core_type = #tpu.core_type<tc>, window_params = [{transform_indices = @transform_0, window_bounds = array<i64: 8, 32>}, {pipeline_mode = #tpu.pipeline_mode<synchronous>, transform_indices = @transform_1, window_bounds = array<i64: 32, 256>}, {pipeline_mode = #tpu.pipeline_mode<synchronous>, transform_indices = @transform_2, window_bounds = array<i64: 1, 256>}, {pipeline_mode = #tpu.pipeline_mode<synchronous>, transform_indices = @transform_3, window_bounds = array<i64: 256, 128>}, {pipeline_mode = #tpu.pipeline_mode<synchronous>, transform_indices = @transform_4, window_bounds = array<i64: 1, 128>}, {transform_indices = @transform_5, window_bounds = array<i64: 8, 8>}]} {
    %c0 = arith.constant 0 : index
    %c0_0 = arith.constant 0 : index
    %0 = vector.load %arg1[%c0, %c0_0] : memref<8x32xf32, #tpu.memory_space<vmem>>, vector<8x32xf32>
    %c0_1 = arith.constant 0 : index
    %c0_2 = arith.constant 0 : index
    %1 = vector.load %arg2[%c0_1, %c0_2] : memref<32x256xf32, #tpu.memory_space<vmem>>, vector<32x256xf32>
    %cst = arith.constant dense<0.000000e+00> : vector<8x256xf32>
    %2 = tpu.matmul %0, %1, %cst {dimension_numbers = #tpu.dot_dimension_numbers<[1], [0], [0], [1], [0, 0, 1, 1], [], []>} : vector<8x32xf32>, vector<32x256xf32>, vector<8x256xf32> -> vector<8x256xf32>
    %c0_3 = arith.constant 0 : index
    %c0_4 = arith.constant 0 : index
    %3 = vector.load %arg3[%c0_3, %c0_4] : memref<1x256xf32, #tpu.memory_space<vmem>>, vector<1x256xf32>
    %4 = vector.broadcast %3 : vector<1x256xf32> to vector<8x256xf32>
    %5 = arith.addf %2, %4 : vector<8x256xf32>
    %cst_5 = arith.constant 0.000000e+00 : f32
    %6 = vector.broadcast %cst_5 : f32 to vector<8x256xf32>
    %7 = arith.maximumf %5, %6 : vector<8x256xf32>
    %c0_6 = arith.constant 0 : index
    %c0_7 = arith.constant 0 : index
    %8 = vector.load %arg4[%c0_6, %c0_7] : memref<256x128xf32, #tpu.memory_space<vmem>>, vector<256x128xf32>
    %cst_8 = arith.constant dense<0.000000e+00> : vector<8x128xf32>
    %9 = tpu.matmul %7, %8, %cst_8 {dimension_numbers = #tpu.dot_dimension_numbers<[1], [0], [0], [1], [0, 0, 1, 1], [], []>} : vector<8x256xf32>, vector<256x128xf32>, vector<8x128xf32> -> vector<8x128xf32>
    %c0_9 = arith.constant 0 : index
    %c0_10 = arith.constant 0 : index
    %10 = vector.load %arg5[%c0_9, %c0_10] : memref<1x128xf32, #tpu.memory_space<vmem>>, vector<1x128xf32>
    %11 = vector.broadcast %10 : vector<1x128xf32> to vector<8x128xf32>
    %12 = arith.addf %9, %11 : vector<8x128xf32>
    %13 = vector.extract_strided_slice %12 {offsets = [0, 0], sizes = [8, 8], strides = [1, 1]} : vector<8x128xf32> to vector<8x8xf32>
    %14 = vector.extract_strided_slice %12 {offsets = [0, 127], sizes = [8, 1], strides = [1, 1]} : vector<8x128xf32> to vector<8x1xf32>
    %15 = vector.extract_strided_slice %12 {offsets = [0, 126], sizes = [8, 1], strides = [1, 1]} : vector<8x128xf32> to vector<8x1xf32>
    %16 = vector.broadcast %14 : vector<8x1xf32> to vector<8x8xf32>
    %17 = arith.addf %16, %13 : vector<8x8xf32>
    %18 = vector.broadcast %15 : vector<8x1xf32> to vector<8x8xf32>
    %19 = arith.subf %17, %18 : vector<8x8xf32>
    %c0_11 = arith.constant 0 : index
    %c0_12 = arith.constant 0 : index
    %20 = vector.load %arg6[%c0_11, %c0_12] : memref<8x8xf32, #tpu.memory_space<vmem>>, vector<8x8xf32>
    tpu.vector_store %arg6[%c0_11, %c0_12], %19 {strides = array<i32>} : memref<8x8xf32, #tpu.memory_space<vmem>>, vector<8x8xf32>,
    return
  }
  func.func @transform_0(%arg0: i32) -> (i32, i32) {
    %c0_i32 = arith.constant 0 : i32
    %c0_i32_0 = arith.constant 0 : i32
    return %arg0, %c0_i32 : i32, i32
  }
  func.func @transform_1(%arg0: i32) -> (i32, i32) {
    %c0_i32 = arith.constant 0 : i32
    %c0_i32_0 = arith.constant 0 : i32
    %c0_i32_1 = arith.constant 0 : i32
    return %c0_i32, %c0_i32_0 : i32, i32
  }
  func.func @transform_2(%arg0: i32) -> (i32, i32) {
    %c0_i32 = arith.constant 0 : i32
    %c0_i32_0 = arith.constant 0 : i32
    %c0_i32_1 = arith.constant 0 : i32
    return %c0_i32, %c0_i32_0 : i32, i32
  }
  func.func @transform_3(%arg0: i32) -> (i32, i32) {
    %c0_i32 = arith.constant 0 : i32
    %c0_i32_0 = arith.constant 0 : i32
    %c0_i32_1 = arith.constant 0 : i32
    return %c0_i32, %c0_i32_0 : i32, i32
  }
  func.func @transform_4(%arg0: i32) -> (i32, i32) {
    %c0_i32 = arith.constant 0 : i32
    %c0_i32_0 = arith.constant 0 : i32
    %c0_i32_1 = arith.constant 0 : i32
    return %c0_i32, %c0_i32_0 : i32, i32
  }
  func.func @transform_5(%arg0: i32) -> (i32, i32) {
    %c0_i32 = arith.constant 0 : i32
    %c0_i32_0 = arith.constant 0 : i32
    return %arg0, %c0_i32 : i32, i32
  }
}

</mosaic_0001>

<bundles_post_ra>
// kernel: tpu_custom_call.1
= control target key start
LH: loop header
LB: loop body
LE: loop exit
PB: predicated region body
PF: predicated region fallthrough
CT: control target
= control target key end

     0   :  { %10 = vsyncpa [#allocation3], 0  ;;  %s452_s0 = inlined_call_operand.hbm [shape: f32[8,32], index: 0, kind: input, shape index: {}]   ;;  %s453_s1 = inlined_call_operand.hbm [shape: f32[32,256], index: 1, kind: input, shape index: {}]   ;;  %s454_s2 = inlined_call_operand.hbm [shape: f32[1,256], index: 2, kind: input, shape index: {}]   ;;  %s455_s3 = inlined_call_operand.hbm [shape: f32[256,128], index: 3, kind: input, shape index: {}]   ;;  %s456_s4 = inlined_call_operand.vmem [shape: f32[1,128], index: 4, kind: input, shape index: {}]   ;;  %s457_s5 = inlined_call_operand.hbm [shape: f32[8,8], index: 5, kind: output, shape index: {}]  }
   0x1   :  { %11 = vsyncpa [#allocation6], 0 }
   0x2   :  { %12 = vsyncpa [#allocation9], 0  ;;  %s29_s20 = sshll.u32 %s453_s1, 4  ;;  %s30_s20 = int_to_ptr.hbm [resolvable:$true] %s29_s20 }
   0x3   :  { %13 = vsyncpa [#allocation4], 0  ;;  %s393_s21 = smov [#allocation5]   ;;  %s19_s25 = sshll.u32 %s452_s0, 4  ;;  %s20_s25 = int_to_ptr.hbm [resolvable:$true] %s19_s25 }
   0x4   :  { %s31_s22 = sshll.u32 %s393_s21, 4  ;;  %s394_s26 = smov 256   ;;  %s32_s22 = int_to_ptr.vmem [resolvable:$true] %s31_s22 }
   0x5   :  { %s395_s27 = smov 16   ;;  %s396_s28 = smov [#allocation2]  }
   0x6   :  { %37 = dma.hbm_to_vmem [thread:$0]  %s30_s20, 1024, %s32_s22, [#allocation6], %s394_s26, %s394_s26, %s395_s27  }
   0x7   :  { %s21_s29 = sshll.u32 %s396_s28, 4  ;;  %s43_s7 = sshll.u32 %s454_s2, 4  ;;  %s22_s29 = int_to_ptr.vmem [resolvable:$true] %s21_s29  ;;  %s44_s7 = int_to_ptr.hbm [resolvable:$true] %s43_s7 }
   0x8   :  { %24 = dma.hbm_to_vmem [thread:$0]  %s20_s25, 128, %s22_s29, [#allocation3]  }
   0x9   :  { %s53_s9 = sshll.u32 %s455_s3, 4  ;;  %s397_s10 = smov [#allocation7]   ;;  %s54_s9 = int_to_ptr.hbm [resolvable:$true] %s53_s9 }
   0xa   :  { %s45_s11 = sshll.u32 %s397_s10, 4  ;;  %s398_s0 = smov [#allocation8]   ;;  %s46_s11 = int_to_ptr.vmem [resolvable:$true] %s45_s11 }
   0xb   :  { %48 = dma.hbm_to_vmem [thread:$0]  %s44_s7, 32, %s46_s11, [#allocation6]  }
   0xc   :  { %s55_s12 = sshll.u32 %s398_s0, 4  ;;  %s399_s13 = smov 128   ;;  %s56_s12 = int_to_ptr.vmem [resolvable:$true] %s55_s12 }
   0xd   :  { %s400_s14 = smov 8  }
   0xe   :  { %61 = dma.hbm_to_vmem [thread:$0]  %s54_s9, 4096, %s56_s12, [#allocation9], %s399_s13, %s399_s13, %s400_s14  }
   0xf   :  { %385 = dma.done.wait [#allocation3], 128  }
  0x10   :  { %386 = vsyncadd [#allocation3], 4294967168 }
  0x11   :  { %387 = dma.done.wait [#allocation6], 1056  }
  0x12   :  { %388 = vsyncadd [#allocation6], 4294966240 }
  0x13   :  { %389 = dma.done.wait [#allocation9], 4096  }
  0x14   :  { %390 = vsyncadd [#allocation9], 4294963200  ;;  %v87_v0 = vld [vmem:[#allocation5 + $0x30] sm:$0xff]  ;;  %v85_v1 = vld [vmem:[#allocation5 + $0x20] sm:$0xff]  ;;  %vm95_vm0 = vcmask 261120   ;;  %v401_v50 = vmov 127  }
  0x15   :  { %v88_v2 = vld [vmem:[#allocation5 + $0x38] sm:$0xff]  ;;  %111 = vmatpush.msra.mxu0 %v87_v0  ;;  %v86_v3 = vld [vmem:[#allocation5 + $0x28] sm:$0xff]  ;;  %v83_v4 = vld [vmem:[#allocation5 + $0x10] sm:$0xff]  ;;  %262 = vset.pattern.permute.xlu0 %v401_v50  ;;  %v402_v56 = vmov 126   ;;  %s403_s15 = smov [#allocation10]   ;;  %s237_s19 = sshll.u32 %s457_s5, 4  ;;  %s238_s19 = int_to_ptr.hbm [resolvable:$true] %s237_s19 }
  0x16   :  { %131 = vmatpush.msra.mxu1 %v88_v2  ;;  %v84_v5 = vld [vmem:[#allocation5 + $0x18] sm:$0xff]  ;;  %v81_v9 = vld [vmem:[#allocation5] sm:$0xff]  ;;  %v82_v10 = vld [vmem:[#allocation5 + $0x8] sm:$0xff]  ;;  %s235_s16 = sshll.u32 %s403_s15, 4  ;;  %vm228_vm1 = vcmask 64512   ;;  %s236_s16 = int_to_ptr.vmem [resolvable:$true] %s235_s16 }
  0x17   :  { %112 = vmatpush.msra.mxu0 %v85_v1  ;;  %v156_v6 = vld [vmem:[#allocation8 + $0x78] sm:$0xff]  ;;  %v155_v7 = vld [vmem:[#allocation8 + $0x70] sm:$0xff]  ;;  %v154_v13 = vld [vmem:[#allocation8 + $0x68] sm:$0xff] }
  0x18   :  { %132 = vmatpush.msra.mxu1 %v86_v3  ;;  %v172_v8 = vld [vmem:[#allocation8 + $0xf8] sm:$0xff]  ;;  %177 = vmatpush.msra.mxu2 %v156_v6  ;;  %v171_v11 = vld [vmem:[#allocation8 + $0xf0] sm:$0xff]  ;;  %v170_v14 = vld [vmem:[#allocation8 + $0xe8] sm:$0xff] }
  0x19   :  { %197 = vmatpush.msra.mxu3 %v172_v8  ;;  %113 = vmatpush.msra.mxu0 %v83_v4  ;;  %v80_v12 = vld [vmem:[#allocation2] sm:$0xff]  ;;  %v153_v15 = vld [vmem:[#allocation8 + $0x60] sm:$0xff]  ;;  %v150_v21 = vld [vmem:[#allocation8 + $0x48] sm:$0xff] }
  0x1a   :  { %133 = vmatpush.msra.mxu1 %v84_v5  ;;  %178 = vmatpush.msra.mxu2 %v155_v7  ;;  %v169_v16 = vld [vmem:[#allocation8 + $0xe0] sm:$0xff]  ;;  %v152_v17 = vld [vmem:[#allocation8 + $0x58] sm:$0xff]  ;;  %v151_v19 = vld [vmem:[#allocation8 + $0x50] sm:$0xff] }
  0x1b   :  { %198 = vmatpush.msra.mxu3 %v171_v11  ;;  %114 = vmatpush.msra.mxu0 %v81_v9  ;;  %v168_v18 = vld [vmem:[#allocation8 + $0xd8] sm:$0xff]  ;;  %v167_v20 = vld [vmem:[#allocation8 + $0xd0] sm:$0xff]  ;;  %v166_v22 = vld [vmem:[#allocation8 + $0xc8] sm:$0xff] }
  0x1c   :  { %134 = vmatpush.msra.mxu1 %v82_v10  ;;  %249 = vmatmul.msk.f32.vlgmr.msra.gmra.mxu0 %vm95_vm0, %v80_v12  ;;  %v149_v23 = vld [vmem:[#allocation8 + $0x40] sm:$0xff]  ;;  %v148_v25 = vld [vmem:[#allocation8 + $0x38] sm:$0xff]  ;;  %v147_v27 = vld [vmem:[#allocation8 + $0x30] sm:$0xff] }
  0x1d   :  { %250 = vmatmul.msk.f32.vlgmr.msra.gmra.mxu1 %vm95_vm0, %v80_v12  ;;  %179 = vmatpush.msra.mxu2 %v154_v13  ;;  %v165_v24 = vld [vmem:[#allocation8 + $0xc0] sm:$0xff]  ;;  %v164_v26 = vld [vmem:[#allocation8 + $0xb8] sm:$0xff]  ;;  %v163_v28 = vld [vmem:[#allocation8 + $0xb0] sm:$0xff] }
  0x1e   :  { %199 = vmatpush.msra.mxu3 %v170_v14  ;;  %v146_v29 = vld [vmem:[#allocation8 + $0x28] sm:$0xff]  ;;  %v145_v31 = vld [vmem:[#allocation8 + $0x20] sm:$0xff]  ;;  %v144_v33 = vld [vmem:[#allocation8 + $0x18] sm:$0xff] }
  0x1f   :  { %180 = vmatpush.msra.mxu2 %v153_v15  ;;  %v162_v30 = vld [vmem:[#allocation8 + $0xa8] sm:$0xff]  ;;  %v161_v32 = vld [vmem:[#allocation8 + $0xa0] sm:$0xff]  ;;  %v143_v34 = vld [vmem:[#allocation8 + $0x10] sm:$0xff] }
  0x20   :  { %200 = vmatpush.msra.mxu3 %v169_v16  ;;  %v160_v35 = vld [vmem:[#allocation8 + $0x98] sm:$0xff]  ;;  %v142_v36 = vld [vmem:[#allocation8 + $0x8] sm:$0xff]  ;;  %v159_v37 = vld [vmem:[#allocation8 + $0x90] sm:$0xff] }
  0x21   :  { %181 = vmatpush.msra.mxu2 %v152_v17  ;;  %v141_v38 = vld [vmem:[#allocation8] sm:$0xff]  ;;  %v158_v39 = vld [vmem:[#allocation8 + $0x88] sm:$0xff]  ;;  %v89_v41 = vld [vmem:[#allocation7] sm:$0x3] }
  0x22   :  { %201 = vmatpush.msra.mxu3 %v168_v18  ;;  %v157_v40 = vld [vmem:[#allocation8 + $0x80] sm:$0xff]  ;;  %v91_v42 = vperm.slane %v89_v41, 0  ;;  %v92_v43 = vperm.slane %v89_v41, 1  ;;  %v264_v51 = vld [vmem:[%s456_s4] ss:$0 sm:$0xff] }
  0x23   :  { %182 = vmatpush.msra.mxu2 %v151_v19 }
  0x24   :  { %202 = vmatpush.msra.mxu3 %v167_v20 }
  0x25   :  { %183 = vmatpush.msra.mxu2 %v150_v21 }
  0x26   :  { %203 = vmatpush.msra.mxu3 %v166_v22 }
  0x27   :  { %184 = vmatpush.msra.mxu2 %v149_v23 }
  0x28   :  { %204 = vmatpush.msra.mxu3 %v165_v24 }
  0x29   :  { %185 = vmatpush.msra.mxu2 %v148_v25 }
  0x2a   :  { %205 = vmatpush.msra.mxu3 %v164_v26 }
  0x2b   :  { %186 = vmatpush.msra.mxu2 %v147_v27 }
  0x2c   :  { %206 = vmatpush.msra.mxu3 %v163_v28 }
  0x2d   :  { %187 = vmatpush.msra.mxu2 %v146_v29 }
  0x2e   :  { %207 = vmatpush.msra.mxu3 %v162_v30 }
  0x2f   :  { %188 = vmatpush.msra.mxu2 %v145_v31 }
  0x30   :  { %208 = vmatpush.msra.mxu3 %v161_v32 }
  0x31   :  { %189 = vmatpush.msra.mxu2 %v144_v33 }
  0x32   :  { %209 = vmatpush.msra.mxu3 %v160_v35 }
  0x33   :  { %190 = vmatpush.msra.mxu2 %v143_v34 }
  0x34   :  { %210 = vmatpush.msra.mxu3 %v159_v37 }
  0x35   :  { %191 = vmatpush.msra.mxu2 %v142_v36 }
  0x36   :  { %211 = vmatpush.msra.mxu3 %v158_v39 }
  0x37   :  { %192 = vmatpush.msra.mxu2 %v141_v38 }
  0x38   :  { %212 = vmatpush.msra.mxu3 %v157_v40 }
  0x99   :  { %v116_v44 = vpop.f32.mrf.mxu0 }
  0x9a   :  { %v136_v45 = vpop.f32.mrf.mxu1  ;;  %v117_v46 = vadd.f32 %v116_v44, %v91_v42 }
  0x9b   :  { %v137_v47 = vadd.f32 %v136_v45, %v92_v43 }
  0x9c   :  { %v139_v48 = vmax.f32 %v117_v46, 0.0 }
  0x9d   :  { %v140_v49 = vmax.f32 %v137_v47, 0.0 }
  0x9e   :  { %193 = vmatmul.f32.vlgmr.msra.gmra.mxu2 %v139_v48 }
  0x9f   :  { %213 = vmatmul.f32.vlgmr.msra.gmra.mxu3 %v140_v49 }
 0x121   :  { %v194_v52 = vpop.f32.mrf.mxu2 }
 0x122   :  { %v214_v53 = vpop.f32.mrf.mxu3  ;;  %v195_v54 = vadd.f32 %v264_v51, %v194_v52 }
 0x124   :  { %v215_v55 = vadd.f32 %v214_v53, %v195_v54 }
 0x126   :  { %219 = vperm.xlu0 %262, %v215_v55  }
 0x12e   :  { %263 = vset.pattern.permute.xlu0 %v402_v56 }
 0x12f   :  { %224 = vperm.xlu0 %263, %v215_v55  }
 0x198   :  { %v220_v57 = vpop.permute.xlu0 %219 }
 0x199   :  { %v222_v58 = vadd.f32 %v220_v57, %v215_v55 }
 0x1a1   :  { %v225_v59 = vpop.permute.xlu0 %224 }
 0x1a2   :  { %v227_v60 = vsub.f32 %v222_v58, %v225_v59 }
 0x1a4   :  { %229 = vst.msk [vmem:[#allocation10] sm:$0xff] %vm228_vm1, %v227_v60 }
 0x1a5   :  { %240 = dma.vmem_to_hbm [thread:$0]  %s236_s16, 128, %s238_s19, [#allocation4]  }
 0x1a6   :  { %391 = dma.done.wait [#allocation4], 128  }
 0x1a7   :  { %392 = vsyncadd [#allocation4], 4294967168 }
 0x1a8   :  { %245 = vsyncpa [#allocation3], 1 }
 0x1a9   :  { %246 = vsyncpa [#allocation6], 1 }
 0x1aa   :  { %247 = vsyncpa [#allocation9], 1 }
 0x1ab   :  { %248 = vsyncpa [#allocation4], 1 }

</bundles_post_ra>
